<compile_context>
chip_gen: v6e
topology: v6e:2x2x1
jax: 0.10.0
libtpu: 0.0.40
codegen_flags: <defaults>
</compile_context>

<pallas_src>
import functools
import math

import jax
import jax.numpy as jnp
from jax.experimental import pallas as pl
from jax.experimental.pallas import tpu as pltpu


def _maxpool_kernel(x_body_ref, x_halo_ref, o_ref, vm_ref, above_ref, *,
                    rows, out_w):
    """One (row-block, channel-tile) step of the 3x3 / stride-2 / pad-1 pool.

    x_body_ref: (2*rows, W, NCt)  input rows [2*rows*r, 2*rows*(r+1))
    x_halo_ref: (1, W, NCt)       input row 2*rows*r - 1 (clamped; zeroed r==0)
    o_ref:      (rows, out_w, NCt)
    vm_ref:     (W + 1, NCt)      scratch: [0] = left zero pad, [1:] = row max
    above_ref:  (W, NCt)          scratch for the "row above" of output row 0
    """
    r = pl.program_id(0)
    w_in = x_body_ref.shape[1]

    # Row just above this block. For the first row block that row is the zero
    # padding (the module pads with zeros, not -inf), so overwrite with zeros.
    above_ref[...] = x_halo_ref[0, :, :]

    @pl.when(r == 0)
    def _():
        above_ref[...] = jnp.zeros_like(above_ref)

    # Left zero-padding column of the row-max staging buffer (written once).
    vm_ref[0:1, :] = jnp.zeros((1, vm_ref.shape[1]), vm_ref.dtype)

    above = above_ref[...]
    for t in range(rows):                      # static unroll, rows <= 8
        center = x_body_ref[2 * t, :, :]       # input row 2*i
        below = x_body_ref[2 * t + 1, :, :]    # input row 2*i + 1
        # Vertical max over the 3 kernel rows: dense full-width loads + 2 vmax.
        vm_ref[pl.ds(1, w_in), :] = jnp.maximum(jnp.maximum(above, center),
                                                below)
        # Horizontal stride-2 max over the zero-left-padded row max:
        # output col j takes padded cols {2j, 2j+1, 2j+2}.
        win0 = vm_ref[pl.ds(0, out_w, 2), :]
        win1 = vm_ref[pl.ds(1, out_w, 2), :]
        win2 = vm_ref[pl.ds(2, out_w, 2), :]
        o_ref[t, :, :] = jnp.maximum(jnp.maximum(win0, win1),
                                     win2).astype(o_ref.dtype)
        above = below                          # row 2*i+1 == row 2*(i+1) - 1


def max_pooling_2d(x, kernel_size=3, stride=2, padding=1):
    """Zero-padded max pooling matching the PyTorch MaxPooling2d module."""
    assert x.ndim == 4
    # TODO(synk): generalize the halo/tiling math to arbitrary (K, stride, pad);
    # the optimized kernel is specialized to the module defaults.
    assert (kernel_size, stride, padding) == (3, 2, 1), \
        "kernel specialized to kernel_size=3, stride=2, padding=1"

    N, C, H, W = x.shape
    out_h = (H + 2 * padding - kernel_size) // stride + 1
    out_w = (W + 2 * padding - kernel_size) // stride + 1
    NC = N * C
    He, We = 2 * out_h, 2 * out_w   # rows/cols actually read by the kernel
    itemsize = jnp.dtype(x.dtype).itemsize

    # ---- glue: layout only (no zero-padding HBM pass, no dtype upcast) ----
    xr = x.reshape(NC, H, W)
    if He != H or We != W:
        # Only for odd H / W: the bottom/right zero row/col of the reference.
        xr = jnp.pad(xr, ((0, 0), (0, He - H), (0, We - W)))
    # N*C onto the 128-lane dim; stride-2 window math stays on leading/sublane.
    # TODO(synk): produce/consume this (H, W, N*C) layout in neighboring ops to
    # remove the two transpose HBM passes (the pool itself is memory bound).
    xk = jnp.transpose(xr, (1, 2, 0))          # (He, We, NC)

    # ---- tile sizes (sized for v7x's 64 MiB VMEM; bigger gens get headroom) ----
    LANE = 128
    if NC % LANE == 0:
        nc_tile = next(c for c in (512, 384, 256, 128) if NC % c == 0)
    else:
        # Small / ragged NC (e.g. the 8-channel test): use the full extent as a
        # single lane block instead of padding NC to 128, which would inflate
        # HBM traffic 16x for a bandwidth-bound op.
        nc_tile = NC
    rows = math.gcd(out_h, 8)                  # output rows per grid step
    while rows > 1 and 2 * rows * We * nc_tile * itemsize > (4 << 20):
        rows //= 2                             # keep double-buffered blocks <= ~8 MiB
    if nc_tile > LANE and NC % LANE == 0 and \
            2 * rows * We * nc_tile * itemsize > (4 << 20):
        nc_tile = LANE

    kern = functools.partial(_maxpool_kernel, rows=rows, out_w=out_w)

    out = pl.pallas_call(
        kern,
        out_shape=jax.ShapeDtypeStruct((out_h, out_w, NC), jnp.float32),
        grid=(out_h // rows, NC // nc_tile),
        in_specs=[
            # body: the 2*rows input rows owned by this row block
            pl.BlockSpec((2 * rows, We, nc_tile), lambda r, c: (r, 0, c)),
            # halo: the single input row just above the body block
            # (row 2*rows*r - 1), clamped at 0 and zeroed in-kernel for r == 0.
            pl.BlockSpec((1, We, nc_tile),
                         lambda r, c: (jnp.maximum(2 * rows * r - 1, 0), 0, c)),
        ],
        out_specs=pl.BlockSpec((rows, out_w, nc_tile), lambda r, c: (r, 0, c)),
        scratch_shapes=[
            pltpu.VMEM((We + 1, nc_tile), x.dtype),   # row-max staging (+ left pad col)
            pltpu.VMEM((We, nc_tile), x.dtype),       # "row above" of output row 0
        ],
        compiler_params=pltpu.CompilerParams(
            # Row blocks and channel tiles are fully independent -> both TCs on v7x.
            dimension_semantics=("parallel", "parallel"),
            vmem_limit_bytes=32 * 1024 * 1024,
        ),
    )(xk, xk)

    # glue: back to NCHW (f32 output, matching torch.zeros in the reference)
    return jnp.transpose(out, (2, 0, 1)).reshape(N, C, out_h, out_w)


def _reference(x):
    # Pure-JAX reference with identical zero-padding semantics to the module.
    xp = jnp.pad(x.astype(jnp.float32), ((0, 0), (0, 0), (1, 1), (1, 1)))
    return jax.lax.reduce_window(xp, -jnp.inf, jax.lax.max,
                                 (1, 1, 3, 3), (1, 1, 2, 2), "VALID")


if __name__ == "__main__":
    key = jax.random.PRNGKey(0)

    # Primary shape from the module spec.
    N, C, H, W = 2, 4, 16, 16
    x = jax.random.normal(key, (N, C, H, W), dtype=jnp.float32)
    y = jax.block_until_ready(max_pooling_2d(x))
    y_ref = _reference(x)
    assert y.shape == (N, C, 8, 8) and y.dtype == jnp.float32
    assert jnp.allclose(y, y_ref), "mismatch vs reference (primary shape)"

    # Extra shapes: multi row-block (halo path), odd H/W (edge zero pad),
    # channel tiling (NC multiple of 128, >1 lane tiles).
    for shape in ((1, 2, 32, 32), (1, 3, 17, 15), (1, 1024, 8, 8)):
        xs = jax.random.normal(jax.random.PRNGKey(0), shape, dtype=jnp.float32)
        ys = jax.block_until_ready(max_pooling_2d(xs))
        assert jnp.allclose(ys, _reference(xs)), f"mismatch vs reference {shape}"

    print("KERNEL_OK")
</pallas_src>

<mosaic_0001>
module attributes {stable_mosaic.version = 11 : i64} {
  func.func @_maxpool_kernel(%arg0: i32, %arg1: i32, %arg2: memref<16x16x8xf32, #tpu.memory_space<vmem>>, %arg3: memref<1x16x8xf32, #tpu.memory_space<vmem>>, %arg4: memref<8x8x8xf32, #tpu.memory_space<vmem>>, %arg5: memref<17x8xf32, #tpu.memory_space<vmem>>, %arg6: memref<16x8xf32, #tpu.memory_space<vmem>>) attributes {dimension_semantics = [#tpu.dimension_semantics<parallel>, #tpu.dimension_semantics<parallel>], iteration_bounds = array<i64: 1, 1>, scalar_prefetch = 0 : i64, scratch_operands = 2 : i64, tpu.core_type = #tpu.core_type<tc>, window_params = [{transform_indices = @transform_0, window_bounds = array<i64: 16, 16, 8>}, {transform_indices = @transform_1, window_bounds = array<i64: 1, 16, 8>}, {transform_indices = @transform_2, window_bounds = array<i64: 8, 8, 8>}]} {
    %c0 = arith.constant 0 : index
    %c0_0 = arith.constant 0 : index
    %c0_1 = arith.constant 0 : index
    %0 = vector.load %arg3[%c0, %c0_0, %c0_1] : memref<1x16x8xf32, #tpu.memory_space<vmem>>, vector<1x16x8xf32>
    %1 = vector.shape_cast %0 : vector<1x16x8xf32> to vector<16x8xf32>
    %c0_2 = arith.constant 0 : index
    %c0_3 = arith.constant 0 : index
    %2 = vector.load %arg6[%c0_2, %c0_3] : memref<16x8xf32, #tpu.memory_space<vmem>>, vector<16x8xf32>
    tpu.vector_store %arg6[%c0_2, %c0_3], %1 {strides = array<i32>} : memref<16x8xf32, #tpu.memory_space<vmem>>, vector<16x8xf32>,
    %c0_i32 = arith.constant 0 : i32
    %3 = arith.cmpi eq, %arg0, %c0_i32 : i32
    %4 = arith.extui %3 : i1 to i32
    %c0_i32_4 = arith.constant 0 : i32
    %5 = arith.cmpi ne, %4, %c0_i32_4 : i32
    scf.if %5 {
      %cst_130 = arith.constant 0.000000e+00 : f32
      %129 = vector.broadcast %cst_130 : f32 to vector<16x8xf32>
      %c0_131 = arith.constant 0 : index
      %c0_132 = arith.constant 0 : index
      %130 = vector.load %arg6[%c0_131, %c0_132] : memref<16x8xf32, #tpu.memory_space<vmem>>, vector<16x8xf32>
      tpu.vector_store %arg6[%c0_131, %c0_132], %129 {strides = array<i32>} : memref<16x8xf32, #tpu.memory_space<vmem>>, vector<16x8xf32>,
    } else {
    }
    %cst = arith.constant 0.000000e+00 : f32
    %6 = vector.broadcast %cst : f32 to vector<1x8xf32>
    %c0_5 = arith.constant 0 : index
    %c0_6 = arith.constant 0 : index
    %7 = vector.load %arg5[%c0_5, %c0_6] : memref<17x8xf32, #tpu.memory_space<vmem>>, vector<1x8xf32>
    tpu.vector_store %arg5[%c0_5, %c0_6], %6 {strides = array<i32>} : memref<17x8xf32, #tpu.memory_space<vmem>>, vector<1x8xf32>,
    %c0_7 = arith.constant 0 : index
    %c0_8 = arith.constant 0 : index
    %8 = vector.load %arg6[%c0_7, %c0_8] : memref<16x8xf32, #tpu.memory_space<vmem>>, vector<16x8xf32>
    %c0_9 = arith.constant 0 : index
    %c0_10 = arith.constant 0 : index
    %c0_11 = arith.constant 0 : index
    %9 = vector.load %arg2[%c0_9, %c0_10, %c0_11] : memref<16x16x8xf32, #tpu.memory_space<vmem>>, vector<1x16x8xf32>
    %10 = vector.shape_cast %9 : vector<1x16x8xf32> to vector<16x8xf32>
    %c1 = arith.constant 1 : index
    %c0_12 = arith.constant 0 : index
    %c0_13 = arith.constant 0 : index
    %11 = vector.load %arg2[%c1, %c0_12, %c0_13] : memref<16x16x8xf32, #tpu.memory_space<vmem>>, vector<1x16x8xf32>
    %12 = vector.shape_cast %11 : vector<1x16x8xf32> to vector<16x8xf32>
    %13 = arith.maximumf %8, %10 : vector<16x8xf32>
    %14 = arith.maximumf %13, %12 : vector<16x8xf32>
    %c1_14 = arith.constant 1 : index
    %c0_15 = arith.constant 0 : index
    %15 = vector.load %arg5[%c1_14, %c0_15] : memref<17x8xf32, #tpu.memory_space<vmem>>, vector<16x8xf32>
    tpu.vector_store %arg5[%c1_14, %c0_15], %14 {strides = array<i32>} : memref<17x8xf32, #tpu.memory_space<vmem>>, vector<16x8xf32>,
    %c0_16 = arith.constant 0 : index
    %c0_17 = arith.constant 0 : index
    %16 = tpu.strided_load %arg5[%c0_16, %c0_17] {strides = array<i32: 2, 1>} : memref<17x8xf32, #tpu.memory_space<vmem>>, vector<8x8xf32>
    %c1_18 = arith.constant 1 : index
    %c0_19 = arith.constant 0 : index
    %17 = tpu.strided_load %arg5[%c1_18, %c0_19] {strides = array<i32: 2, 1>} : memref<17x8xf32, #tpu.memory_space<vmem>>, vector<8x8xf32>
    %c2 = arith.constant 2 : index
    %c0_20 = arith.constant 0 : index
    %18 = tpu.strided_load %arg5[%c2, %c0_20] {strides = array<i32: 2, 1>} : memref<17x8xf32, #tpu.memory_space<vmem>>, vector<8x8xf32>
    %19 = arith.maximumf %16, %17 : vector<8x8xf32>
    %20 = arith.maximumf %19, %18 : vector<8x8xf32>
    %c0_21 = arith.constant 0 : index
    %c0_22 = arith.constant 0 : index
    %c0_23 = arith.constant 0 : index
    %21 = vector.load %arg4[%c0_21, %c0_22, %c0_23] : memref<8x8x8xf32, #tpu.memory_space<vmem>>, vector<1x8x8xf32>
    %22 = vector.shape_cast %21 : vector<1x8x8xf32> to vector<8x8xf32>
    %23 = vector.shape_cast %20 : vector<8x8xf32> to vector<1x8x8xf32>
    tpu.vector_store %arg4[%c0_21, %c0_22, %c0_23], %23 {strides = array<i32>} : memref<8x8x8xf32, #tpu.memory_space<vmem>>, vector<1x8x8xf32>,
    %c2_24 = arith.constant 2 : index
    %c0_25 = arith.constant 0 : index
    %c0_26 = arith.constant 0 : index
    %24 = vector.load %arg2[%c2_24, %c0_25, %c0_26] : memref<16x16x8xf32, #tpu.memory_space<vmem>>, vector<1x16x8xf32>
    %25 = vector.shape_cast %24 : vector<1x16x8xf32> to vector<16x8xf32>
    %c3 = arith.constant 3 : index
    %c0_27 = arith.constant 0 : index
    %c0_28 = arith.constant 0 : index
    %26 = vector.load %arg2[%c3, %c0_27, %c0_28] : memref<16x16x8xf32, #tpu.memory_space<vmem>>, vector<1x16x8xf32>
    %27 = vector.shape_cast %26 : vector<1x16x8xf32> to vector<16x8xf32>
    %28 = arith.maximumf %12, %25 : vector<16x8xf32>
    %29 = arith.maximumf %28, %27 : vector<16x8xf32>
    %c1_29 = arith.constant 1 : index
    %c0_30 = arith.constant 0 : index
    %30 = vector.load %arg5[%c1_29, %c0_30] : memref<17x8xf32, #tpu.memory_space<vmem>>, vector<16x8xf32>
    tpu.vector_store %arg5[%c1_29, %c0_30], %29 {strides = array<i32>} : memref<17x8xf32, #tpu.memory_space<vmem>>, vector<16x8xf32>,
    %c0_31 = arith.constant 0 : index
    %c0_32 = arith.constant 0 : index
    %31 = tpu.strided_load %arg5[%c0_31, %c0_32] {strides = array<i32: 2, 1>} : memref<17x8xf32, #tpu.memory_space<vmem>>, vector<8x8xf32>
    %c1_33 = arith.constant 1 : index
    %c0_34 = arith.constant 0 : index
    %32 = tpu.strided_load %arg5[%c1_33, %c0_34] {strides = array<i32: 2, 1>} : memref<17x8xf32, #tpu.memory_space<vmem>>, vector<8x8xf32>
    %c2_35 = arith.constant 2 : index
    %c0_36 = arith.constant 0 : index
    %33 = tpu.strided_load %arg5[%c2_35, %c0_36] {strides = array<i32: 2, 1>} : memref<17x8xf32, #tpu.memory_space<vmem>>, vector<8x8xf32>
    %34 = arith.maximumf %31, %32 : vector<8x8xf32>
    %35 = arith.maximumf %34, %33 : vector<8x8xf32>
    %c1_37 = arith.constant 1 : index
    %c0_38 = arith.constant 0 : index
    %c0_39 = arith.constant 0 : index
    %36 = vector.load %arg4[%c1_37, %c0_38, %c0_39] : memref<8x8x8xf32, #tpu.memory_space<vmem>>, vector<1x8x8xf32>
    %37 = vector.shape_cast %36 : vector<1x8x8xf32> to vector<8x8xf32>
    %38 = vector.shape_cast %35 : vector<8x8xf32> to vector<1x8x8xf32>
    tpu.vector_store %arg4[%c1_37, %c0_38, %c0_39], %38 {strides = array<i32>} : memref<8x8x8xf32, #tpu.memory_space<vmem>>, vector<1x8x8xf32>,
    %c4 = arith.constant 4 : index
    %c0_40 = arith.constant 0 : index
    %c0_41 = arith.constant 0 : index
    %39 = vector.load %arg2[%c4, %c0_40, %c0_41] : memref<16x16x8xf32, #tpu.memory_space<vmem>>, vector<1x16x8xf32>
    %40 = vector.shape_cast %39 : vector<1x16x8xf32> to vector<16x8xf32>
    %c5 = arith.constant 5 : index
    %c0_42 = arith.constant 0 : index
    %c0_43 = arith.constant 0 : index
    %41 = vector.load %arg2[%c5, %c0_42, %c0_43] : memref<16x16x8xf32, #tpu.memory_space<vmem>>, vector<1x16x8xf32>
    %42 = vector.shape_cast %41 : vector<1x16x8xf32> to vector<16x8xf32>
    %43 = arith.maximumf %27, %40 : vector<16x8xf32>
    %44 = arith.maximumf %43, %42 : vector<16x8xf32>
    %c1_44 = arith.constant 1 : index
    %c0_45 = arith.constant 0 : index
    %45 = vector.load %arg5[%c1_44, %c0_45] : memref<17x8xf32, #tpu.memory_space<vmem>>, vector<16x8xf32>
    tpu.vector_store %arg5[%c1_44, %c0_45], %44 {strides = array<i32>} : memref<17x8xf32, #tpu.memory_space<vmem>>, vector<16x8xf32>,
    %c0_46 = arith.constant 0 : index
    %c0_47 = arith.constant 0 : index
    %46 = tpu.strided_load %arg5[%c0_46, %c0_47] {strides = array<i32: 2, 1>} : memref<17x8xf32, #tpu.memory_space<vmem>>, vector<8x8xf32>
    %c1_48 = arith.constant 1 : index
    %c0_49 = arith.constant 0 : index
    %47 = tpu.strided_load %arg5[%c1_48, %c0_49] {strides = array<i32: 2, 1>} : memref<17x8xf32, #tpu.memory_space<vmem>>, vector<8x8xf32>
    %c2_50 = arith.constant 2 : index
    %c0_51 = arith.constant 0 : index
    %48 = tpu.strided_load %arg5[%c2_50, %c0_51] {strides = array<i32: 2, 1>} : memref<17x8xf32, #tpu.memory_space<vmem>>, vector<8x8xf32>
    %49 = arith.maximumf %46, %47 : vector<8x8xf32>
    %50 = arith.maximumf %49, %48 : vector<8x8xf32>
    %c2_52 = arith.constant 2 : index
    %c0_53 = arith.constant 0 : index
    %c0_54 = arith.constant 0 : index
    %51 = vector.load %arg4[%c2_52, %c0_53, %c0_54] : memref<8x8x8xf32, #tpu.memory_space<vmem>>, vector<1x8x8xf32>
    %52 = vector.shape_cast %51 : vector<1x8x8xf32> to vector<8x8xf32>
    %53 = vector.shape_cast %50 : vector<8x8xf32> to vector<1x8x8xf32>
    tpu.vector_store %arg4[%c2_52, %c0_53, %c0_54], %53 {strides = array<i32>} : memref<8x8x8xf32, #tpu.memory_space<vmem>>, vector<1x8x8xf32>,
    %c6 = arith.constant 6 : index
    %c0_55 = arith.constant 0 : index
    %c0_56 = arith.constant 0 : index
    %54 = vector.load %arg2[%c6, %c0_55, %c0_56] : memref<16x16x8xf32, #tpu.memory_space<vmem>>, vector<1x16x8xf32>
    %55 = vector.shape_cast %54 : vector<1x16x8xf32> to vector<16x8xf32>
    %c7 = arith.constant 7 : index
    %c0_57 = arith.constant 0 : index
    %c0_58 = arith.constant 0 : index
    %56 = vector.load %arg2[%c7, %c0_57, %c0_58] : memref<16x16x8xf32, #tpu.memory_space<vmem>>, vector<1x16x8xf32>
    %57 = vector.shape_cast %56 : vector<1x16x8xf32> to vector<16x8xf32>
    %58 = arith.maximumf %42, %55 : vector<16x8xf32>
    %59 = arith.maximumf %58, %57 : vector<16x8xf32>
    %c1_59 = arith.constant 1 : index
    %c0_60 = arith.constant 0 : index
    %60 = vector.load %arg5[%c1_59, %c0_60] : memref<17x8xf32, #tpu.memory_space<vmem>>, vector<16x8xf32>
    tpu.vector_store %arg5[%c1_59, %c0_60], %59 {strides = array<i32>} : memref<17x8xf32, #tpu.memory_space<vmem>>, vector<16x8xf32>,
    %c0_61 = arith.constant 0 : index
    %c0_62 = arith.constant 0 : index
    %61 = tpu.strided_load %arg5[%c0_61, %c0_62] {strides = array<i32: 2, 1>} : memref<17x8xf32, #tpu.memory_space<vmem>>, vector<8x8xf32>
    %c1_63 = arith.constant 1 : index
    %c0_64 = arith.constant 0 : index
    %62 = tpu.strided_load %arg5[%c1_63, %c0_64] {strides = array<i32: 2, 1>} : memref<17x8xf32, #tpu.memory_space<vmem>>, vector<8x8xf32>
    %c2_65 = arith.constant 2 : index
    %c0_66 = arith.constant 0 : index
    %63 = tpu.strided_load %arg5[%c2_65, %c0_66] {strides = array<i32: 2, 1>} : memref<17x8xf32, #tpu.memory_space<vmem>>, vector<8x8xf32>
    %64 = arith.maximumf %61, %62 : vector<8x8xf32>
    %65 = arith.maximumf %64, %63 : vector<8x8xf32>
    %c3_67 = arith.constant 3 : index
    %c0_68 = arith.constant 0 : index
    %c0_69 = arith.constant 0 : index
    %66 = vector.load %arg4[%c3_67, %c0_68, %c0_69] : memref<8x8x8xf32, #tpu.memory_space<vmem>>, vector<1x8x8xf32>
    %67 = vector.shape_cast %66 : vector<1x8x8xf32> to vector<8x8xf32>
    %68 = vector.shape_cast %65 : vector<8x8xf32> to vector<1x8x8xf32>
    tpu.vector_store %arg4[%c3_67, %c0_68, %c0_69], %68 {strides = array<i32>} : memref<8x8x8xf32, #tpu.memory_space<vmem>>, vector<1x8x8xf32>,
    %c8 = arith.constant 8 : index
    %c0_70 = arith.constant 0 : index
    %c0_71 = arith.constant 0 : index
    %69 = vector.load %arg2[%c8, %c0_70, %c0_71] : memref<16x16x8xf32, #tpu.memory_space<vmem>>, vector<1x16x8xf32>
    %70 = vector.shape_cast %69 : vector<1x16x8xf32> to vector<16x8xf32>
    %c9 = arith.constant 9 : index
    %c0_72 = arith.constant 0 : index
    %c0_73 = arith.constant 0 : index
    %71 = vector.load %arg2[%c9, %c0_72, %c0_73] : memref<16x16x8xf32, #tpu.memory_space<vmem>>, vector<1x16x8xf32>
    %72 = vector.shape_cast %71 : vector<1x16x8xf32> to vector<16x8xf32>
    %73 = arith.maximumf %57, %70 : vector<16x8xf32>
    %74 = arith.maximumf %73, %72 : vector<16x8xf32>
    %c1_74 = arith.constant 1 : index
    %c0_75 = arith.constant 0 : index
    %75 = vector.load %arg5[%c1_74, %c0_75] : memref<17x8xf32, #tpu.memory_space<vmem>>, vector<16x8xf32>
    tpu.vector_store %arg5[%c1_74, %c0_75], %74 {strides = array<i32>} : memref<17x8xf32, #tpu.memory_space<vmem>>, vector<16x8xf32>,
    %c0_76 = arith.constant 0 : index
    %c0_77 = arith.constant 0 : index
    %76 = tpu.strided_load %arg5[%c0_76, %c0_77] {strides = array<i32: 2, 1>} : memref<17x8xf32, #tpu.memory_space<vmem>>, vector<8x8xf32>
    %c1_78 = arith.constant 1 : index
    %c0_79 = arith.constant 0 : index
    %77 = tpu.strided_load %arg5[%c1_78, %c0_79] {strides = array<i32: 2, 1>} : memref<17x8xf32, #tpu.memory_space<vmem>>, vector<8x8xf32>
    %c2_80 = arith.constant 2 : index
    %c0_81 = arith.constant 0 : index
    %78 = tpu.strided_load %arg5[%c2_80, %c0_81] {strides = array<i32: 2, 1>} : memref<17x8xf32, #tpu.memory_space<vmem>>, vector<8x8xf32>
    %79 = arith.maximumf %76, %77 : vector<8x8xf32>
    %80 = arith.maximumf %79, %78 : vector<8x8xf32>
    %c4_82 = arith.constant 4 : index
    %c0_83 = arith.constant 0 : index
    %c0_84 = arith.constant 0 : index
    %81 = vector.load %arg4[%c4_82, %c0_83, %c0_84] : memref<8x8x8xf32, #tpu.memory_space<vmem>>, vector<1x8x8xf32>
    %82 = vector.shape_cast %81 : vector<1x8x8xf32> to vector<8x8xf32>
    %83 = vector.shape_cast %80 : vector<8x8xf32> to vector<1x8x8xf32>
    tpu.vector_store %arg4[%c4_82, %c0_83, %c0_84], %83 {strides = array<i32>} : memref<8x8x8xf32, #tpu.memory_space<vmem>>, vector<1x8x8xf32>,
    %c10 = arith.constant 10 : index
    %c0_85 = arith.constant 0 : index
    %c0_86 = arith.constant 0 : index
    %84 = vector.load %arg2[%c10, %c0_85, %c0_86] : memref<16x16x8xf32, #tpu.memory_space<vmem>>, vector<1x16x8xf32>
    %85 = vector.shape_cast %84 : vector<1x16x8xf32> to vector<16x8xf32>
    %c11 = arith.constant 11 : index
    %c0_87 = arith.constant 0 : index
    %c0_88 = arith.constant 0 : index
    %86 = vector.load %arg2[%c11, %c0_87, %c0_88] : memref<16x16x8xf32, #tpu.memory_space<vmem>>, vector<1x16x8xf32>
    %87 = vector.shape_cast %86 : vector<1x16x8xf32> to vector<16x8xf32>
    %88 = arith.maximumf %72, %85 : vector<16x8xf32>
    %89 = arith.maximumf %88, %87 : vector<16x8xf32>
    %c1_89 = arith.constant 1 : index
    %c0_90 = arith.constant 0 : index
    %90 = vector.load %arg5[%c1_89, %c0_90] : memref<17x8xf32, #tpu.memory_space<vmem>>, vector<16x8xf32>
    tpu.vector_store %arg5[%c1_89, %c0_90], %89 {strides = array<i32>} : memref<17x8xf32, #tpu.memory_space<vmem>>, vector<16x8xf32>,
    %c0_91 = arith.constant 0 : index
    %c0_92 = arith.constant 0 : index
    %91 = tpu.strided_load %arg5[%c0_91, %c0_92] {strides = array<i32: 2, 1>} : memref<17x8xf32, #tpu.memory_space<vmem>>, vector<8x8xf32>
    %c1_93 = arith.constant 1 : index
    %c0_94 = arith.constant 0 : index
    %92 = tpu.strided_load %arg5[%c1_93, %c0_94] {strides = array<i32: 2, 1>} : memref<17x8xf32, #tpu.memory_space<vmem>>, vector<8x8xf32>
    %c2_95 = arith.constant 2 : index
    %c0_96 = arith.constant 0 : index
    %93 = tpu.strided_load %arg5[%c2_95, %c0_96] {strides = array<i32: 2, 1>} : memref<17x8xf32, #tpu.memory_space<vmem>>, vector<8x8xf32>
    %94 = arith.maximumf %91, %92 : vector<8x8xf32>
    %95 = arith.maximumf %94, %93 : vector<8x8xf32>
    %c5_97 = arith.constant 5 : index
    %c0_98 = arith.constant 0 : index
    %c0_99 = arith.constant 0 : index
    %96 = vector.load %arg4[%c5_97, %c0_98, %c0_99] : memref<8x8x8xf32, #tpu.memory_space<vmem>>, vector<1x8x8xf32>
    %97 = vector.shape_cast %96 : vector<1x8x8xf32> to vector<8x8xf32>
    %98 = vector.shape_cast %95 : vector<8x8xf32> to vector<1x8x8xf32>
    tpu.vector_store %arg4[%c5_97, %c0_98, %c0_99], %98 {strides = array<i32>} : memref<8x8x8xf32, #tpu.memory_space<vmem>>, vector<1x8x8xf32>,
    %c12 = arith.constant 12 : index
    %c0_100 = arith.constant 0 : index
    %c0_101 = arith.constant 0 : index
    %99 = vector.load %arg2[%c12, %c0_100, %c0_101] : memref<16x16x8xf32, #tpu.memory_space<vmem>>, vector<1x16x8xf32>
    %100 = vector.shape_cast %99 : vector<1x16x8xf32> to vector<16x8xf32>
    %c13 = arith.constant 13 : index
    %c0_102 = arith.constant 0 : index
    %c0_103 = arith.constant 0 : index
    %101 = vector.load %arg2[%c13, %c0_102, %c0_103] : memref<16x16x8xf32, #tpu.memory_space<vmem>>, vector<1x16x8xf32>
    %102 = vector.shape_cast %101 : vector<1x16x8xf32> to vector<16x8xf32>
    %103 = arith.maximumf %87, %100 : vector<16x8xf32>
    %104 = arith.maximumf %103, %102 : vector<16x8xf32>
    %c1_104 = arith.constant 1 : index
    %c0_105 = arith.constant 0 : index
    %105 = vector.load %arg5[%c1_104, %c0_105] : memref<17x8xf32, #tpu.memory_space<vmem>>, vector<16x8xf32>
    tpu.vector_store %arg5[%c1_104, %c0_105], %104 {strides = array<i32>} : memref<17x8xf32, #tpu.memory_space<vmem>>, vector<16x8xf32>,
    %c0_106 = arith.constant 0 : index
    %c0_107 = arith.constant 0 : index
    %106 = tpu.strided_load %arg5[%c0_106, %c0_107] {strides = array<i32: 2, 1>} : memref<17x8xf32, #tpu.memory_space<vmem>>, vector<8x8xf32>
    %c1_108 = arith.constant 1 : index
    %c0_109 = arith.constant 0 : index
    %107 = tpu.strided_load %arg5[%c1_108, %c0_109] {strides = array<i32: 2, 1>} : memref<17x8xf32, #tpu.memory_space<vmem>>, vector<8x8xf32>
    %c2_110 = arith.constant 2 : index
    %c0_111 = arith.constant 0 : index
    %108 = tpu.strided_load %arg5[%c2_110, %c0_111] {strides = array<i32: 2, 1>} : memref<17x8xf32, #tpu.memory_space<vmem>>, vector<8x8xf32>
    %109 = arith.maximumf %106, %107 : vector<8x8xf32>
    %110 = arith.maximumf %109, %108 : vector<8x8xf32>
    %c6_112 = arith.constant 6 : index
    %c0_113 = arith.constant 0 : index
    %c0_114 = arith.constant 0 : index
    %111 = vector.load %arg4[%c6_112, %c0_113, %c0_114] : memref<8x8x8xf32, #tpu.memory_space<vmem>>, vector<1x8x8xf32>
    %112 = vector.shape_cast %111 : vector<1x8x8xf32> to vector<8x8xf32>
    %113 = vector.shape_cast %110 : vector<8x8xf32> to vector<1x8x8xf32>
    tpu.vector_store %arg4[%c6_112, %c0_113, %c0_114], %113 {strides = array<i32>} : memref<8x8x8xf32, #tpu.memory_space<vmem>>, vector<1x8x8xf32>,
    %c14 = arith.constant 14 : index
    %c0_115 = arith.constant 0 : index
    %c0_116 = arith.constant 0 : index
    %114 = vector.load %arg2[%c14, %c0_115, %c0_116] : memref<16x16x8xf32, #tpu.memory_space<vmem>>, vector<1x16x8xf32>
    %115 = vector.shape_cast %114 : vector<1x16x8xf32> to vector<16x8xf32>
    %c15 = arith.constant 15 : index
    %c0_117 = arith.constant 0 : index
    %c0_118 = arith.constant 0 : index
    %116 = vector.load %arg2[%c15, %c0_117, %c0_118] : memref<16x16x8xf32, #tpu.memory_space<vmem>>, vector<1x16x8xf32>
    %117 = vector.shape_cast %116 : vector<1x16x8xf32> to vector<16x8xf32>
    %118 = arith.maximumf %102, %115 : vector<16x8xf32>
    %119 = arith.maximumf %118, %117 : vector<16x8xf32>
    %c1_119 = arith.constant 1 : index
    %c0_120 = arith.constant 0 : index
    %120 = vector.load %arg5[%c1_119, %c0_120] : memref<17x8xf32, #tpu.memory_space<vmem>>, vector<16x8xf32>
    tpu.vector_store %arg5[%c1_119, %c0_120], %119 {strides = array<i32>} : memref<17x8xf32, #tpu.memory_space<vmem>>, vector<16x8xf32>,
    %c0_121 = arith.constant 0 : index
    %c0_122 = arith.constant 0 : index
    %121 = tpu.strided_load %arg5[%c0_121, %c0_122] {strides = array<i32: 2, 1>} : memref<17x8xf32, #tpu.memory_space<vmem>>, vector<8x8xf32>
    %c1_123 = arith.constant 1 : index
    %c0_124 = arith.constant 0 : index
    %122 = tpu.strided_load %arg5[%c1_123, %c0_124] {strides = array<i32: 2, 1>} : memref<17x8xf32, #tpu.memory_space<vmem>>, vector<8x8xf32>
    %c2_125 = arith.constant 2 : index
    %c0_126 = arith.constant 0 : index
    %123 = tpu.strided_load %arg5[%c2_125, %c0_126] {strides = array<i32: 2, 1>} : memref<17x8xf32, #tpu.memory_space<vmem>>, vector<8x8xf32>
    %124 = arith.maximumf %121, %122 : vector<8x8xf32>
    %125 = arith.maximumf %124, %123 : vector<8x8xf32>
    %c7_127 = arith.constant 7 : index
    %c0_128 = arith.constant 0 : index
    %c0_129 = arith.constant 0 : index
    %126 = vector.load %arg4[%c7_127, %c0_128, %c0_129] : memref<8x8x8xf32, #tpu.memory_space<vmem>>, vector<1x8x8xf32>
    %127 = vector.shape_cast %126 : vector<1x8x8xf32> to vector<8x8xf32>
    %128 = vector.shape_cast %125 : vector<8x8xf32> to vector<1x8x8xf32>
    tpu.vector_store %arg4[%c7_127, %c0_128, %c0_129], %128 {strides = array<i32>} : memref<8x8x8xf32, #tpu.memory_space<vmem>>, vector<1x8x8xf32>,
    return
  }
  func.func @transform_0(%arg0: i32, %arg1: i32) -> (i32, i32, i32) {
    %c0_i32 = arith.constant 0 : i32
    %c0_i32_0 = arith.constant 0 : i32
    return %arg0, %c0_i32, %arg1 : i32, i32, i32
  }
  func.func @transform_1(%arg0: i32, %arg1: i32) -> (i32, i32, i32) {
    %c16_i32 = arith.constant 16 : i32
    %0 = arith.muli %c16_i32, %arg0 : i32
    %c1_i32 = arith.constant 1 : i32
    %1 = arith.subi %0, %c1_i32 : i32
    %c0_i32 = arith.constant 0 : i32
    %2 = arith.maxsi %1, %c0_i32 : i32
    %c0_i32_0 = arith.constant 0 : i32
    %c0_i32_1 = arith.constant 0 : i32
    return %2, %c0_i32_0, %arg1 : i32, i32, i32
  }
  func.func @transform_2(%arg0: i32, %arg1: i32) -> (i32, i32, i32) {
    %c0_i32 = arith.constant 0 : i32
    %c0_i32_0 = arith.constant 0 : i32
    return %arg0, %c0_i32, %arg1 : i32, i32, i32
  }
}

</mosaic_0001>

<bundles_post_ra>
// kernel: tpu_custom_call.1
= control target key start
LH: loop header
LB: loop body
LE: loop exit
PB: predicated region body
PF: predicated region fallthrough
CT: control target
= control target key end

     0   :  { %vm49_vm0 = vcmask 64512   ;;  %vm58_vm1 = vcmask 57344   ;;  %v292_v2 = vmov 0.0   ;;  %s444_s0 = inlined_call_operand.vmem [shape: f32[16,16,8], index: 0, kind: input, shape index: {}]   ;;  %s445_s1 = inlined_call_operand.vmem [shape: f32[16,16,8], index: 1, kind: input, shape index: {}]   ;;  %s446_s2 = inlined_call_operand.hbm [shape: f32[8,8,8], index: 2, kind: output, shape index: {}]  }
   0x1   :  { %v47_v0 = vld [vmem:[%s445_s1] sm:$0xff]  ;;  %v48_v1 = vld [vmem:[%s445_s1 + $0x8] sm:$0xff]  ;;  %59 = vst.msk [vmem:[#allocation2] sm:$0x1] %vm58_vm1, %v292_v2  ;;  %v236_v5 = vld [vmem:[%s444_s0 + $0x10] sm:$0xff] }
   0x2   :  { %50 = vst.msk [vmem:[#allocation3] sm:$0xff] %vm49_vm0, %v47_v0  ;;  %51 = vst.msk [vmem:[#allocation3 + $0x8] sm:$0xff] %vm49_vm0, %v48_v1  ;;  %v62_v3 = vld [vmem:[%s444_s0] sm:$0xff]  ;;  %v63_v4 = vld [vmem:[%s444_s0 + $0x8] sm:$0xff] }
   0x3   :  { %56 = vst.msk [vmem:[#allocation3] sm:$0xff] %vm49_vm0, %v292_v2  ;;  %57 = vst.msk [vmem:[#allocation3 + $0x8] sm:$0xff] %vm49_vm0, %v292_v2  ;;  %v237_v8 = vld [vmem:[%s444_s0 + $0x18] sm:$0xff]  ;;  %v238_v11 = vld [vmem:[%s444_s0 + $0x20] sm:$0xff] }
   0x4   :  { %v239_v12 = vld [vmem:[%s444_s0 + $0x28] sm:$0xff] }
   0xa   :  { %v60_v6 = vld [vmem:[#allocation3] sm:$0xff]  ;;  %v61_v7 = vld [vmem:[#allocation3 + $0x8] sm:$0xff] }
   0xb   :  { %v67_v9 = vmax.f32 %v60_v6, %v62_v3  ;;  %v68_v10 = vmax.f32 %v61_v7, %v63_v4 }
   0xd   :  { %v69_v13 = vmax.f32 %v67_v9, %v236_v5  ;;  %v70_v14 = vmax.f32 %v68_v10, %v237_v8 }
   0xe   :  { %7 = vsyncpa [#allocation5], 0  ;;  %v87_v15 = vmax.f32 %v236_v5, %v238_v11  ;;  %v88_v16 = vmax.f32 %v237_v8, %v239_v12  ;;  %v240_v17 = vld [vmem:[%s444_s0 + $0x30] sm:$0xff]  ;;  %v241_v18 = vld [vmem:[%s444_s0 + $0x38] sm:$0xff]  ;;  %s293_s18 = smov [#allocation4]  }
   0xf   :  { %71 = vst.msk [vmem:[#allocation2 + $0x1] sm:$0xff] %vm49_vm0, %v69_v13  ;;  %72 = vst.msk [vmem:[#allocation2 + $0x9] sm:$0xff] %vm49_vm0, %v70_v14  ;;  %v242_v21 = vld [vmem:[%s444_s0 + $0x40] sm:$0xff]  ;;  %v243_v22 = vld [vmem:[%s444_s0 + $0x48] sm:$0xff] }
  0x10   :  { %v89_v19 = vmax.f32 %v87_v15, %v240_v17  ;;  %v90_v20 = vmax.f32 %v88_v16, %v241_v18  ;;  %v106_v26 = vmax.f32 %v240_v17, %v242_v21  ;;  %v107_v27 = vmax.f32 %v241_v18, %v243_v22  ;;  %v244_v29 = vld [vmem:[%s444_s0 + $0x50] sm:$0xff]  ;;  %v245_v30 = vld [vmem:[%s444_s0 + $0x58] sm:$0xff]  ;;  %v246_v34 = vld [vmem:[%s444_s0 + $0x60] sm:$0xff] }
  0x11   :  { %v247_v35 = vld [vmem:[%s444_s0 + $0x68] sm:$0xff]  ;;  %v125_v39 = vmax.f32 %v244_v29, %v246_v34  ;;  %v248_v42 = vld [vmem:[%s444_s0 + $0x70] sm:$0xff]  ;;  %v249_v43 = vld [vmem:[%s444_s0 + $0x78] sm:$0xff] }
  0x12   :  { %v108_v32 = vmax.f32 %v106_v26, %v244_v29  ;;  %v109_v33 = vmax.f32 %v107_v27, %v245_v30  ;;  %v126_v40 = vmax.f32 %v245_v30, %v247_v35  ;;  %v250_v47 = vld [vmem:[%s444_s0 + $0x80] sm:$0xff]  ;;  %v251_v48 = vld [vmem:[%s444_s0 + $0x88] sm:$0xff]  ;;  %v252_v55 = vld [vmem:[%s444_s0 + $0x90] sm:$0xff] }
  0x13   :  { %v127_v45 = vmax.f32 %v125_v39, %v248_v42  ;;  %v144_v52 = vmax.f32 %v248_v42, %v250_v47  ;;  %v145_v53 = vmax.f32 %v249_v43, %v251_v48  ;;  %v253_v56 = vld [vmem:[%s444_s0 + $0x98] sm:$0xff]  ;;  %v254_v60 = vld [vmem:[%s444_s0 + $0xa0] sm:$0xff]  ;;  %v255_v61 = vld [vmem:[%s444_s0 + $0xa8] sm:$0xff] }
  0x14   :  { %v128_v46 = vmax.f32 %v126_v40, %v249_v43  ;;  %v163_v1 = vmax.f32 %v252_v55, %v254_v60  ;;  %v164_v2 = vmax.f32 %v253_v56, %v255_v61  ;;  %v256_v4 = vld [vmem:[%s444_s0 + $0xb0] sm:$0xff]  ;;  %v257_v5 = vld [vmem:[%s444_s0 + $0xb8] sm:$0xff]  ;;  %v258_v9 = vld [vmem:[%s444_s0 + $0xc0] sm:$0xff] }
  0x15   :  { %v146_v58 = vmax.f32 %v144_v52, %v252_v55  ;;  %v147_v59 = vmax.f32 %v145_v53, %v253_v56  ;;  %v259_v10 = vld [vmem:[%s444_s0 + $0xc8] sm:$0xff]  ;;  %v182_v14 = vmax.f32 %v256_v4, %v258_v9  ;;  %v260_v17 = vld [vmem:[%s444_s0 + $0xd0] sm:$0xff]  ;;  %v261_v18 = vld [vmem:[%s444_s0 + $0xd8] sm:$0xff] }
  0x16   :  { %v73_v23 = vld [vmem:[#allocation2] ss:$2 sm:$0xff]  ;;  %v75_v24 = vld [vmem:[#allocation2 + $0x1] ss:$2 sm:$0xff]  ;;  %v165_v7 = vmax.f32 %v163_v1, %v256_v4  ;;  %v166_v8 = vmax.f32 %v164_v2, %v257_v5  ;;  %v183_v15 = vmax.f32 %v257_v5, %v259_v10  ;;  %v264_v30 = vld [vmem:[%s444_s0 + $0xf0] sm:$0xff] }
  0x17   :  { %v77_v25 = vld [vmem:[#allocation2 + $0x2] ss:$2 sm:$0xff]  ;;  %v78_v28 = vmax.f32 %v73_v23, %v75_v24 }
  0x18   :  { %91 = vst.msk [vmem:[#allocation2 + $0x1] sm:$0xff] %vm49_vm0, %v89_v19  ;;  %92 = vst.msk [vmem:[#allocation2 + $0x9] sm:$0xff] %vm49_vm0, %v90_v20  ;;  %v184_v20 = vmax.f32 %v182_v14, %v260_v17  ;;  %v185_v21 = vmax.f32 %v183_v15, %v261_v18  ;;  %v262_v22 = vld [vmem:[%s444_s0 + $0xe0] sm:$0xff]  ;;  %v263_v23 = vld [vmem:[%s444_s0 + $0xe8] sm:$0xff] }
  0x19   :  { %v79_v31 = vmax.f32 %v78_v28, %v77_v25  ;;  %v201_v27 = vmax.f32 %v260_v17, %v262_v22  ;;  %v202_v28 = vmax.f32 %v261_v18, %v263_v23 }
  0x1b   :  { %80 = vst.msk [vmem:[#allocation4] sm:$0xff] %vm49_vm0, %v79_v31  ;;  %v265_v31 = vld [vmem:[%s444_s0 + $0xf8] sm:$0xff]  ;;  %s219_s0 = sshll.u32 %s293_s18, 4  ;;  %s220_s0 = int_to_ptr.vmem [resolvable:$true] %s219_s0 }
  0x1c   :  { %v204_v34 = vmax.f32 %v202_v28, %v265_v31  ;;  %s270_s19 = scalar_lea.vmem %s220_s0, 1024  ;;  %p275_p1 = scmp.lt.s32.totalorder %s220_s0, %s220_s0 }
  0x1d   :  { %p271_p0 = scmp.ne.s32.totalorder %s220_s0, %s270_s19  ;;  %p276_p2 = scmp.lt.s32.totalorder %s270_s19, %s270_s19 }
  0x1f   :  { %v93_v36 = vld [vmem:[#allocation2] ss:$2 sm:$0xff]  ;;  %v94_v37 = vld [vmem:[#allocation2 + $0x1] ss:$2 sm:$0xff]  ;;  %p277_p3 = por %p276_p2, %p275_p1 }
  0x20   :  { %v95_v38 = vld [vmem:[#allocation2 + $0x2] ss:$2 sm:$0xff]  ;;  %v96_v41 = vmax.f32 %v93_v36, %v94_v37 }
  0x21   :  { %110 = vst.msk [vmem:[#allocation2 + $0x1] sm:$0xff] %vm49_vm0, %v108_v32  ;;  %111 = vst.msk [vmem:[#allocation2 + $0x9] sm:$0xff] %vm49_vm0, %v109_v33  ;;  %v203_v33 = vmax.f32 %v201_v27, %v264_v30  ;;  %p278_p4 = pnand %p277_p3, %p271_p0 }
  0x22   :  { %v97_v44 = vmax.f32 %v96_v41, %v95_v38 }
  0x24   :  { %99 = vst.msk [vmem:[#allocation4 + $0x8] sm:$0xff] %vm49_vm0, %v97_v44 }
  0x28   :  { %v112_v49 = vld [vmem:[#allocation2] ss:$2 sm:$0xff]  ;;  %v113_v50 = vld [vmem:[#allocation2 + $0x1] ss:$2 sm:$0xff] }
  0x29   :  { %v114_v51 = vld [vmem:[#allocation2 + $0x2] ss:$2 sm:$0xff]  ;;  %v115_v54 = vmax.f32 %v112_v49, %v113_v50 }
  0x2a   :  { %129 = vst.msk [vmem:[#allocation2 + $0x1] sm:$0xff] %vm49_vm0, %v127_v45  ;;  %130 = vst.msk [vmem:[#allocation2 + $0x9] sm:$0xff] %vm49_vm0, %v128_v46 }
  0x2b   :  { %v116_v57 = vmax.f32 %v115_v54, %v114_v51 }
  0x2d   :  { %118 = vst.msk [vmem:[#allocation4 + $0x10] sm:$0xff] %vm49_vm0, %v116_v57 }
  0x31   :  { %v131_v62 = vld [vmem:[#allocation2] ss:$2 sm:$0xff]  ;;  %v132_v63 = vld [vmem:[#allocation2 + $0x1] ss:$2 sm:$0xff] }
  0x32   :  { %v133_v0 = vld [vmem:[#allocation2 + $0x2] ss:$2 sm:$0xff]  ;;  %v134_v3 = vmax.f32 %v131_v62, %v132_v63 }
  0x33   :  { %148 = vst.msk [vmem:[#allocation2 + $0x1] sm:$0xff] %vm49_vm0, %v146_v58  ;;  %149 = vst.msk [vmem:[#allocation2 + $0x9] sm:$0xff] %vm49_vm0, %v147_v59 }
  0x34   :  { %v135_v6 = vmax.f32 %v134_v3, %v133_v0 }
  0x36   :  { %137 = vst.msk [vmem:[#allocation4 + $0x18] sm:$0xff] %vm49_vm0, %v135_v6 }
  0x3a   :  { %v150_v11 = vld [vmem:[#allocation2] ss:$2 sm:$0xff]  ;;  %v151_v12 = vld [vmem:[#allocation2 + $0x1] ss:$2 sm:$0xff] }
  0x3b   :  { %v152_v13 = vld [vmem:[#allocation2 + $0x2] ss:$2 sm:$0xff]  ;;  %v153_v16 = vmax.f32 %v150_v11, %v151_v12 }
  0x3c   :  { %167 = vst.msk [vmem:[#allocation2 + $0x1] sm:$0xff] %vm49_vm0, %v165_v7  ;;  %168 = vst.msk [vmem:[#allocation2 + $0x9] sm:$0xff] %vm49_vm0, %v166_v8 }
  0x3d   :  { %v154_v19 = vmax.f32 %v153_v16, %v152_v13 }
  0x3f   :  { %156 = vst.msk [vmem:[#allocation4 + $0x20] sm:$0xff] %vm49_vm0, %v154_v19 }
  0x43   :  { %v169_v24 = vld [vmem:[#allocation2] ss:$2 sm:$0xff]  ;;  %v170_v25 = vld [vmem:[#allocation2 + $0x1] ss:$2 sm:$0xff] }
  0x44   :  { %v171_v26 = vld [vmem:[#allocation2 + $0x2] ss:$2 sm:$0xff]  ;;  %v172_v29 = vmax.f32 %v169_v24, %v170_v25 }
  0x45   :  { %186 = vst.msk [vmem:[#allocation2 + $0x1] sm:$0xff] %vm49_vm0, %v184_v20  ;;  %187 = vst.msk [vmem:[#allocation2 + $0x9] sm:$0xff] %vm49_vm0, %v185_v21 }
  0x46   :  { %v173_v32 = vmax.f32 %v172_v29, %v171_v26 }
  0x48   :  { %175 = vst.msk [vmem:[#allocation4 + $0x28] sm:$0xff] %vm49_vm0, %v173_v32 }
  0x4c   :  { %v188_v35 = vld [vmem:[#allocation2] ss:$2 sm:$0xff]  ;;  %v189_v36 = vld [vmem:[#allocation2 + $0x1] ss:$2 sm:$0xff] }
  0x4d   :  { %v190_v37 = vld [vmem:[#allocation2 + $0x2] ss:$2 sm:$0xff]  ;;  %v191_v38 = vmax.f32 %v188_v35, %v189_v36 }
  0x4e   :  { %205 = vst.msk [vmem:[#allocation2 + $0x1] sm:$0xff] %vm49_vm0, %v203_v33  ;;  %206 = vst.msk [vmem:[#allocation2 + $0x9] sm:$0xff] %vm49_vm0, %v204_v34 }
  0x4f   :  { %v192_v39 = vmax.f32 %v191_v38, %v190_v37 }
  0x51   :  { %194 = vst.msk [vmem:[#allocation4 + $0x30] sm:$0xff] %vm49_vm0, %v192_v39 }
  0x55   :  { %v207_v40 = vld [vmem:[#allocation2] ss:$2 sm:$0xff]  ;;  %v208_v41 = vld [vmem:[#allocation2 + $0x1] ss:$2 sm:$0xff] }
  0x56   :  { %v210_v42 = vmax.f32 %v207_v40, %v208_v41  ;;  %v209_v43 = vld [vmem:[#allocation2 + $0x2] ss:$2 sm:$0xff] }
  0x58   :  { %v211_v44 = vmax.f32 %v210_v42, %v209_v43 }
  0x5a   :  { %213 = vst.msk [vmem:[#allocation4 + $0x38] sm:$0xff] %vm49_vm0, %v211_v44 }
  0x5b   :  { %281 = shalt.err (!%p278_p4)
}
  0x5c   :  { %s294_s20 = smov 128   ;;  %s295_s21 = smov 8  }
  0x5d   :  { %225 = dma.vmem_to_hbm [thread:$0]  %s220_s0, 1024, %s446_s2, [#allocation5], %s294_s20, %s294_s20, %s295_s21  }
  0x5e   :  { %290 = dma.done.wait [#allocation5], 1024  }
  0x5f   :  { %291 = vsyncadd [#allocation5], 4294966272 }
  0x60   :  { %229 = vsyncpa [#allocation5], 1 }

</bundles_post_ra>
